<compile_context>
chip_gen: v7x
topology: tpu7x:2x2x1
jax: 0.10.0
libtpu: 0.0.40
codegen_flags: <defaults>
</compile_context>

<pallas_src>
import jax
import jax.numpy as jnp
from jax.experimental import pallas as pl
from jax.experimental.pallas import tpu as pltpu

EPS = 1e-5  # PyTorch GroupNorm default eps


def _gn_silu_block(h2d, tb, L, g_ref, be_ref):
    """GroupNorm(num_groups=1) per sample + SiLU.

    h2d: (tb*L, C) f32; rows of sample i are rows [i*L, (i+1)*L).
    Returns (tb, L, C) f32.
    """
    co = h2d.shape[-1]
    h = h2d.reshape(tb, L, co)
    n = float(L * co)
    # Fused single-pass statistics: one reduction pass over (L, C) per sample.
    s1 = jnp.sum(h, axis=(1, 2), keepdims=True)            # (tb, 1, 1)
    s2 = jnp.sum(h * h, axis=(1, 2), keepdims=True)        # (tb, 1, 1)
    mean = s1 * (1.0 / n)
    var = s2 * (1.0 / n) - mean * mean                      # biased variance (PyTorch GN)
    hn = (h - mean) * jax.lax.rsqrt(var + EPS)
    hn = hn * g_ref[...][None] + be_ref[...][None]           # per-channel affine, (1,1,C)
    return hn * jax.nn.sigmoid(hn)                           # SiLU (EUP, f32)


def embedding_kernel(x_ref,
                     w1_ref, b1_ref, g1_ref, be1_ref,
                     w2_ref, b2_ref, g2_ref, be2_ref,
                     w3_ref, b3_ref, g3_ref, be3_ref,
                     o_ref):
    tb, L, c_in = x_ref.shape

    def layer(h_bf16, w_ref, b_ref, g_ref, be_ref):
        # (tb*L, Cin) @ (Cin, Cout): bf16 operands on the MXU, f32 accumulate.
        acc = jnp.dot(h_bf16, w_ref[...], preferred_element_type=jnp.float32)
        acc = acc + b_ref[...]                               # (1, Cout) bias, lane-aligned
        return _gn_silu_block(acc, tb, L, g_ref, be_ref)     # (tb, L, Cout) f32

    h = x_ref[...].reshape(tb * L, c_in)                     # bf16; free leading-dim merge
    h = layer(h, w1_ref, b1_ref, g1_ref, be1_ref)                                   # (tb, L, 4D)
    h = layer(h.reshape(tb * L, -1).astype(jnp.bfloat16), w2_ref, b2_ref, g2_ref, be2_ref)  # (tb, L, 2D)
    h = layer(h.reshape(tb * L, -1).astype(jnp.bfloat16), w3_ref, b3_ref, g3_ref, be3_ref)  # (tb, L, D)

    # Result is already (tb, L, D): the module's permute(0, 2, 1) is implicit
    # and the store is lane-dense along the channel (D) axis.
    o_ref[...] = h.astype(o_ref.dtype)


def _pick_batch_block(B, L, latent_ndim, budget_bytes=8 << 20):
    """Largest batch tile that (a) divides B, (b) leaves >= 2 grid steps when
    B >= 2 (v7x two-TC balance), (c) keeps f32 intermediates within budget."""
    per_sample = L * (4 * latent_ndim) * 4 * 3               # rough f32 live bytes / sample
    cap = max(1, budget_bytes // max(1, per_sample))
    best = 1 if B >= 2 else B
    for tb in range(1, B + 1):
        if B % tb != 0 or tb > cap:
            continue
        if B // tb >= 2 or B == 1:
            best = tb
    return best


def make_params(key, seq_len, latent_ndim):
    """Deterministic synthetic parameters matching the module's shapes.

    Weights stay in PyTorch (C_out, C_in) layout; bias / GN affine are stored
    lane-aligned as (1, C_out)."""
    dims = [(latent_ndim * 4, seq_len),
            (latent_ndim * 2, latent_ndim * 4),
            (latent_ndim, latent_ndim * 2)]
    params = []
    for (c_out, c_in) in dims:
        key, kw, kb, kg, ke = jax.random.split(key, 5)
        bound = 1.0 / float(c_in) ** 0.5
        w = jax.random.uniform(kw, (c_out, c_in), jnp.float32, -bound, bound)
        b = jax.random.uniform(kb, (1, c_out), jnp.float32, -bound, bound)
        gamma = jax.random.uniform(kg, (1, c_out), jnp.float32, 0.5, 1.5)
        beta = jax.random.uniform(ke, (1, c_out), jnp.float32, -0.5, 0.5)
        params.extend([w, b, gamma, beta])
    return params


def embedding_forward(x, params, latent_ndim, batch_block=None):
    """x: (B, seq_len, L) float32 (PyTorch NCL). Returns (B, L, latent_ndim) f32."""
    B, c_in, L = x.shape
    D = latent_ndim
    tb = batch_block if batch_block is not None else _pick_batch_block(B, L, D)
    assert B % tb == 0, "batch_block must divide the batch size"
    grid = (B // tb,)

    w1, b1, g1, be1, w2, b2, g2, be2, w3, b3, g3, be3 = params

    # Layout plumbing in the wrapper (plain XLA ops), not in the kernel:
    #  - x -> (B, L, C_in) so the kernel works in (L, C) orientation.
    #  - weights -> (C_in, C_out) bf16 so every matmul is a standard (M,K)@(K,N).
    xt = jnp.transpose(x, (0, 2, 1)).astype(jnp.bfloat16)
    wt = [w.T.astype(jnp.bfloat16) for w in (w1, w2, w3)]
    args = [xt,
            wt[0], b1, g1, be1,
            wt[1], b2, g2, be2,
            wt[2], b3, g3, be3]

    x_spec = pl.BlockSpec((tb, L, c_in), lambda b: (b, 0, 0))
    # Parameters have a constant index_map -> fetched once and revisited each
    # grid step. NOTE: for very large D on v7x (64 MiB VMEM), single-buffer
    # these (pl.Buffered(1) / manual DMA into scratch) to halve their footprint.
    param_specs = [pl.BlockSpec(p.shape, lambda b: (0, 0)) for p in args[1:]]
    out_spec = pl.BlockSpec((tb, L, D), lambda b: (b, 0, 0))

    # Explicit VMEM budget derived from the actual tiles (the default scoped
    # limit of 16/32 MiB is well below physical VMEM).
    f32, bf16 = 4, 2
    m = tb * L
    est = 2 * tb * L * c_in * bf16                      # x, double-buffered
    est += 2 * tb * L * D * f32                         # out, double-buffered
    est += 2 * sum(int(w.size) * bf16 for w in wt)      # weight pipeline buffers
    est += sum(int(p.size) * f32 for p in (b1, g1, be1, b2, g2, be2, b3, g3, be3))
    est += 2 * m * (4 * D + 2 * D + D) * f32            # f32 intermediates + temporaries
    vmem_limit = int(min(100 * 1024 * 1024, max(32 * 1024 * 1024, 2 * est)))

    return pl.pallas_call(
        embedding_kernel,
        out_shape=jax.ShapeDtypeStruct((B, L, D), jnp.float32),
        grid_spec=pltpu.PrefetchScalarGridSpec(
            num_scalar_prefetch=0,
            grid=grid,
            in_specs=[x_spec] + param_specs,
            out_specs=out_spec,
        ),
        compiler_params=pltpu.CompilerParams(
            dimension_semantics=("parallel",),
            vmem_limit_bytes=vmem_limit,
        ),
    )(*args)


def embedding_reference(x, params):
    """Pure-JAX f32 reference matching the PyTorch module semantics."""
    h = x
    for i in range(3):
        w, b, g, be = params[4 * i: 4 * i + 4]
        h = jnp.einsum('oc,bcl->bol', w, h) + b.reshape(1, -1, 1)
        mean = jnp.mean(h, axis=(1, 2), keepdims=True)
        var = jnp.mean((h - mean) ** 2, axis=(1, 2), keepdims=True)
        hn = (h - mean) * jax.lax.rsqrt(var + EPS)
        hn = hn * g.reshape(1, -1, 1) + be.reshape(1, -1, 1)
        h = hn * jax.nn.sigmoid(hn)
    return jnp.transpose(h, (0, 2, 1))


if __name__ == "__main__":
    B, seq_len, latent_ndim, L = 2, 8, 8, 16

    key = jax.random.PRNGKey(0)
    kx, kp = jax.random.split(key)
    x = jax.random.normal(kx, (B, seq_len, L), jnp.float32)
    params = make_params(kp, seq_len, latent_ndim)

    out = embedding_forward(x, params, latent_ndim)
    out = jax.block_until_ready(out)

    ref = embedding_reference(x, params)
    assert out.shape == (B, L, latent_ndim), out.shape
    # bf16 matmul operands (f32 accumulation; GN/SiLU in f32) -> relaxed tolerance.
    max_err = float(jnp.max(jnp.abs(out - ref)))
    assert jnp.allclose(out, ref, atol=5e-2, rtol=5e-2), f"max abs err = {max_err}"

    print("KERNEL_OK")
</pallas_src>

<mosaic_0001>
module attributes {stable_mosaic.version = 11 : i64} {
  func.func @embedding_kernel(%arg0: i32, %arg1: memref<1x16x8xbf16, #tpu.memory_space<vmem>>, %arg2: memref<8x32xbf16, #tpu.memory_space<vmem>>, %arg3: memref<1x32xf32, #tpu.memory_space<vmem>>, %arg4: memref<1x32xf32, #tpu.memory_space<vmem>>, %arg5: memref<1x32xf32, #tpu.memory_space<vmem>>, %arg6: memref<32x16xbf16, #tpu.memory_space<vmem>>, %arg7: memref<1x16xf32, #tpu.memory_space<vmem>>, %arg8: memref<1x16xf32, #tpu.memory_space<vmem>>, %arg9: memref<1x16xf32, #tpu.memory_space<vmem>>, %arg10: memref<16x8xbf16, #tpu.memory_space<vmem>>, %arg11: memref<1x8xf32, #tpu.memory_space<vmem>>, %arg12: memref<1x8xf32, #tpu.memory_space<vmem>>, %arg13: memref<1x8xf32, #tpu.memory_space<vmem>>, %arg14: memref<1x16x8xf32, #tpu.memory_space<vmem>>) attributes {dimension_semantics = [#tpu.dimension_semantics<parallel>], iteration_bounds = array<i64: 2>, scalar_prefetch = 0 : i64, scratch_operands = 0 : i64, tpu.core_type = #tpu.core_type<tc>, window_params = [{transform_indices = @transform_0, window_bounds = array<i64: 1, 16, 8>}, {pipeline_mode = #tpu.pipeline_mode<synchronous>, transform_indices = @transform_1, window_bounds = array<i64: 8, 32>}, {pipeline_mode = #tpu.pipeline_mode<synchronous>, transform_indices = @transform_2, window_bounds = array<i64: 1, 32>}, {pipeline_mode = #tpu.pipeline_mode<synchronous>, transform_indices = @transform_3, window_bounds = array<i64: 1, 32>}, {pipeline_mode = #tpu.pipeline_mode<synchronous>, transform_indices = @transform_4, window_bounds = array<i64: 1, 32>}, {pipeline_mode = #tpu.pipeline_mode<synchronous>, transform_indices = @transform_5, window_bounds = array<i64: 32, 16>}, {pipeline_mode = #tpu.pipeline_mode<synchronous>, transform_indices = @transform_6, window_bounds = array<i64: 1, 16>}, {pipeline_mode = #tpu.pipeline_mode<synchronous>, transform_indices = @transform_7, window_bounds = array<i64: 1, 16>}, {pipeline_mode = #tpu.pipeline_mode<synchronous>, transform_indices = @transform_8, window_bounds = array<i64: 1, 16>}, {pipeline_mode = #tpu.pipeline_mode<synchronous>, transform_indices = @transform_9, window_bounds = array<i64: 16, 8>}, {pipeline_mode = #tpu.pipeline_mode<synchronous>, transform_indices = @transform_10, window_bounds = array<i64: 1, 8>}, {pipeline_mode = #tpu.pipeline_mode<synchronous>, transform_indices = @transform_11, window_bounds = array<i64: 1, 8>}, {pipeline_mode = #tpu.pipeline_mode<synchronous>, transform_indices = @transform_12, window_bounds = array<i64: 1, 8>}, {transform_indices = @transform_13, window_bounds = array<i64: 1, 16, 8>}]} {
    %c0 = arith.constant 0 : index
    %c0_0 = arith.constant 0 : index
    %c0_1 = arith.constant 0 : index
    %0 = vector.load %arg1[%c0, %c0_0, %c0_1] : memref<1x16x8xbf16, #tpu.memory_space<vmem>>, vector<1x16x8xbf16>
    %1 = vector.shape_cast %0 : vector<1x16x8xbf16> to vector<16x8xbf16>
    %c0_2 = arith.constant 0 : index
    %c0_3 = arith.constant 0 : index
    %2 = vector.load %arg2[%c0_2, %c0_3] : memref<8x32xbf16, #tpu.memory_space<vmem>>, vector<8x32xbf16>
    %cst = arith.constant dense<0.000000e+00> : vector<16x32xf32>
    %3 = tpu.matmul %1, %2, %cst {dimension_numbers = #tpu.dot_dimension_numbers<[1], [0], [0], [1], [0, 0, 1, 1], [], []>} : vector<16x8xbf16>, vector<8x32xbf16>, vector<16x32xf32> -> vector<16x32xf32>
    %c0_4 = arith.constant 0 : index
    %c0_5 = arith.constant 0 : index
    %4 = vector.load %arg3[%c0_4, %c0_5] : memref<1x32xf32, #tpu.memory_space<vmem>>, vector<1x32xf32>
    %5 = vector.broadcast %4 : vector<1x32xf32> to vector<16x32xf32>
    %6 = arith.addf %3, %5 : vector<16x32xf32>
    %7 = vector.shape_cast %6 : vector<16x32xf32> to vector<1x16x32xf32>
    %cst_6 = arith.constant dense<0.000000e+00> : vector<1xf32>
    %8 = vector.multi_reduction <add>, %7, %cst_6 [1, 2] : vector<1x16x32xf32> to vector<1xf32>
    %9 = vector.shape_cast %8 : vector<1xf32> to vector<1x1x1xf32>
    %10 = arith.mulf %7, %7 : vector<1x16x32xf32>
    %cst_7 = arith.constant dense<0.000000e+00> : vector<1xf32>
    %11 = vector.multi_reduction <add>, %10, %cst_7 [1, 2] : vector<1x16x32xf32> to vector<1xf32>
    %12 = vector.shape_cast %11 : vector<1xf32> to vector<1x1x1xf32>
    %cst_8 = arith.constant 0.001953125 : f32
    %13 = vector.broadcast %cst_8 : f32 to vector<1x1x1xf32>
    %14 = arith.mulf %9, %13 : vector<1x1x1xf32>
    %cst_9 = arith.constant 0.001953125 : f32
    %15 = vector.broadcast %cst_9 : f32 to vector<1x1x1xf32>
    %16 = arith.mulf %12, %15 : vector<1x1x1xf32>
    %17 = arith.mulf %14, %14 : vector<1x1x1xf32>
    %18 = arith.subf %16, %17 : vector<1x1x1xf32>
    %19 = vector.broadcast %14 : vector<1x1x1xf32> to vector<1x16x32xf32>
    %20 = arith.subf %7, %19 : vector<1x16x32xf32>
    %cst_10 = arith.constant 9.99999974E-6 : f32
    %21 = vector.broadcast %cst_10 : f32 to vector<1x1x1xf32>
    %22 = arith.addf %18, %21 : vector<1x1x1xf32>
    %23 = math.rsqrt %22 : vector<1x1x1xf32>
    %24 = vector.broadcast %23 : vector<1x1x1xf32> to vector<1x16x32xf32>
    %25 = arith.mulf %20, %24 : vector<1x16x32xf32>
    %c0_11 = arith.constant 0 : index
    %c0_12 = arith.constant 0 : index
    %26 = vector.load %arg4[%c0_11, %c0_12] : memref<1x32xf32, #tpu.memory_space<vmem>>, vector<1x32xf32>
    %27 = vector.shape_cast %26 : vector<1x32xf32> to vector<1x1x32xf32>
    %28 = vector.broadcast %27 : vector<1x1x32xf32> to vector<1x16x32xf32>
    %29 = arith.mulf %25, %28 : vector<1x16x32xf32>
    %c0_13 = arith.constant 0 : index
    %c0_14 = arith.constant 0 : index
    %30 = vector.load %arg5[%c0_13, %c0_14] : memref<1x32xf32, #tpu.memory_space<vmem>>, vector<1x32xf32>
    %31 = vector.shape_cast %30 : vector<1x32xf32> to vector<1x1x32xf32>
    %32 = vector.broadcast %31 : vector<1x1x32xf32> to vector<1x16x32xf32>
    %33 = arith.addf %29, %32 : vector<1x16x32xf32>
    %34 = arith.negf %33 : vector<1x16x32xf32>
    %35 = math.exp %34 : vector<1x16x32xf32>
    %cst_15 = arith.constant 1.000000e+00 : f32
    %36 = vector.broadcast %cst_15 : f32 to vector<1x16x32xf32>
    %37 = arith.addf %36, %35 : vector<1x16x32xf32>
    %38 = arith.divf %36, %37 : vector<1x16x32xf32>
    %39 = arith.mulf %33, %38 : vector<1x16x32xf32>
    %40 = vector.shape_cast %39 : vector<1x16x32xf32> to vector<16x32xf32>
    %41 = arith.truncf %40 : vector<16x32xf32> to vector<16x32xbf16>
    %c0_16 = arith.constant 0 : index
    %c0_17 = arith.constant 0 : index
    %42 = vector.load %arg6[%c0_16, %c0_17] : memref<32x16xbf16, #tpu.memory_space<vmem>>, vector<32x16xbf16>
    %cst_18 = arith.constant dense<0.000000e+00> : vector<16x16xf32>
    %43 = tpu.matmul %41, %42, %cst_18 {dimension_numbers = #tpu.dot_dimension_numbers<[1], [0], [0], [1], [0, 0, 1, 1], [], []>} : vector<16x32xbf16>, vector<32x16xbf16>, vector<16x16xf32> -> vector<16x16xf32>
    %c0_19 = arith.constant 0 : index
    %c0_20 = arith.constant 0 : index
    %44 = vector.load %arg7[%c0_19, %c0_20] : memref<1x16xf32, #tpu.memory_space<vmem>>, vector<1x16xf32>
    %45 = vector.broadcast %44 : vector<1x16xf32> to vector<16x16xf32>
    %46 = arith.addf %43, %45 : vector<16x16xf32>
    %47 = vector.shape_cast %46 : vector<16x16xf32> to vector<1x16x16xf32>
    %cst_21 = arith.constant dense<0.000000e+00> : vector<1xf32>
    %48 = vector.multi_reduction <add>, %47, %cst_21 [1, 2] : vector<1x16x16xf32> to vector<1xf32>
    %49 = vector.shape_cast %48 : vector<1xf32> to vector<1x1x1xf32>
    %50 = arith.mulf %47, %47 : vector<1x16x16xf32>
    %cst_22 = arith.constant dense<0.000000e+00> : vector<1xf32>
    %51 = vector.multi_reduction <add>, %50, %cst_22 [1, 2] : vector<1x16x16xf32> to vector<1xf32>
    %52 = vector.shape_cast %51 : vector<1xf32> to vector<1x1x1xf32>
    %cst_23 = arith.constant 3.906250e-03 : f32
    %53 = vector.broadcast %cst_23 : f32 to vector<1x1x1xf32>
    %54 = arith.mulf %49, %53 : vector<1x1x1xf32>
    %cst_24 = arith.constant 3.906250e-03 : f32
    %55 = vector.broadcast %cst_24 : f32 to vector<1x1x1xf32>
    %56 = arith.mulf %52, %55 : vector<1x1x1xf32>
    %57 = arith.mulf %54, %54 : vector<1x1x1xf32>
    %58 = arith.subf %56, %57 : vector<1x1x1xf32>
    %59 = vector.broadcast %54 : vector<1x1x1xf32> to vector<1x16x16xf32>
    %60 = arith.subf %47, %59 : vector<1x16x16xf32>
    %cst_25 = arith.constant 9.99999974E-6 : f32
    %61 = vector.broadcast %cst_25 : f32 to vector<1x1x1xf32>
    %62 = arith.addf %58, %61 : vector<1x1x1xf32>
    %63 = math.rsqrt %62 : vector<1x1x1xf32>
    %64 = vector.broadcast %63 : vector<1x1x1xf32> to vector<1x16x16xf32>
    %65 = arith.mulf %60, %64 : vector<1x16x16xf32>
    %c0_26 = arith.constant 0 : index
    %c0_27 = arith.constant 0 : index
    %66 = vector.load %arg8[%c0_26, %c0_27] : memref<1x16xf32, #tpu.memory_space<vmem>>, vector<1x16xf32>
    %67 = vector.shape_cast %66 : vector<1x16xf32> to vector<1x1x16xf32>
    %68 = vector.broadcast %67 : vector<1x1x16xf32> to vector<1x16x16xf32>
    %69 = arith.mulf %65, %68 : vector<1x16x16xf32>
    %c0_28 = arith.constant 0 : index
    %c0_29 = arith.constant 0 : index
    %70 = vector.load %arg9[%c0_28, %c0_29] : memref<1x16xf32, #tpu.memory_space<vmem>>, vector<1x16xf32>
    %71 = vector.shape_cast %70 : vector<1x16xf32> to vector<1x1x16xf32>
    %72 = vector.broadcast %71 : vector<1x1x16xf32> to vector<1x16x16xf32>
    %73 = arith.addf %69, %72 : vector<1x16x16xf32>
    %74 = arith.negf %73 : vector<1x16x16xf32>
    %75 = math.exp %74 : vector<1x16x16xf32>
    %cst_30 = arith.constant 1.000000e+00 : f32
    %76 = vector.broadcast %cst_30 : f32 to vector<1x16x16xf32>
    %77 = arith.addf %76, %75 : vector<1x16x16xf32>
    %78 = arith.divf %76, %77 : vector<1x16x16xf32>
    %79 = arith.mulf %73, %78 : vector<1x16x16xf32>
    %80 = vector.shape_cast %79 : vector<1x16x16xf32> to vector<16x16xf32>
    %81 = arith.truncf %80 : vector<16x16xf32> to vector<16x16xbf16>
    %c0_31 = arith.constant 0 : index
    %c0_32 = arith.constant 0 : index
    %82 = vector.load %arg10[%c0_31, %c0_32] : memref<16x8xbf16, #tpu.memory_space<vmem>>, vector<16x8xbf16>
    %cst_33 = arith.constant dense<0.000000e+00> : vector<16x8xf32>
    %83 = tpu.matmul %81, %82, %cst_33 {dimension_numbers = #tpu.dot_dimension_numbers<[1], [0], [0], [1], [0, 0, 1, 1], [], []>} : vector<16x16xbf16>, vector<16x8xbf16>, vector<16x8xf32> -> vector<16x8xf32>
    %c0_34 = arith.constant 0 : index
    %c0_35 = arith.constant 0 : index
    %84 = vector.load %arg11[%c0_34, %c0_35] : memref<1x8xf32, #tpu.memory_space<vmem>>, vector<1x8xf32>
    %85 = vector.broadcast %84 : vector<1x8xf32> to vector<16x8xf32>
    %86 = arith.addf %83, %85 : vector<16x8xf32>
    %87 = vector.shape_cast %86 : vector<16x8xf32> to vector<1x16x8xf32>
    %cst_36 = arith.constant dense<0.000000e+00> : vector<1xf32>
    %88 = vector.multi_reduction <add>, %87, %cst_36 [1, 2] : vector<1x16x8xf32> to vector<1xf32>
    %89 = vector.shape_cast %88 : vector<1xf32> to vector<1x1x1xf32>
    %90 = arith.mulf %87, %87 : vector<1x16x8xf32>
    %cst_37 = arith.constant dense<0.000000e+00> : vector<1xf32>
    %91 = vector.multi_reduction <add>, %90, %cst_37 [1, 2] : vector<1x16x8xf32> to vector<1xf32>
    %92 = vector.shape_cast %91 : vector<1xf32> to vector<1x1x1xf32>
    %cst_38 = arith.constant 7.812500e-03 : f32
    %93 = vector.broadcast %cst_38 : f32 to vector<1x1x1xf32>
    %94 = arith.mulf %89, %93 : vector<1x1x1xf32>
    %cst_39 = arith.constant 7.812500e-03 : f32
    %95 = vector.broadcast %cst_39 : f32 to vector<1x1x1xf32>
    %96 = arith.mulf %92, %95 : vector<1x1x1xf32>
    %97 = arith.mulf %94, %94 : vector<1x1x1xf32>
    %98 = arith.subf %96, %97 : vector<1x1x1xf32>
    %99 = vector.broadcast %94 : vector<1x1x1xf32> to vector<1x16x8xf32>
    %100 = arith.subf %87, %99 : vector<1x16x8xf32>
    %cst_40 = arith.constant 9.99999974E-6 : f32
    %101 = vector.broadcast %cst_40 : f32 to vector<1x1x1xf32>
    %102 = arith.addf %98, %101 : vector<1x1x1xf32>
    %103 = math.rsqrt %102 : vector<1x1x1xf32>
    %104 = vector.broadcast %103 : vector<1x1x1xf32> to vector<1x16x8xf32>
    %105 = arith.mulf %100, %104 : vector<1x16x8xf32>
    %c0_41 = arith.constant 0 : index
    %c0_42 = arith.constant 0 : index
    %106 = vector.load %arg12[%c0_41, %c0_42] : memref<1x8xf32, #tpu.memory_space<vmem>>, vector<1x8xf32>
    %107 = vector.shape_cast %106 : vector<1x8xf32> to vector<1x1x8xf32>
    %108 = vector.broadcast %107 : vector<1x1x8xf32> to vector<1x16x8xf32>
    %109 = arith.mulf %105, %108 : vector<1x16x8xf32>
    %c0_43 = arith.constant 0 : index
    %c0_44 = arith.constant 0 : index
    %110 = vector.load %arg13[%c0_43, %c0_44] : memref<1x8xf32, #tpu.memory_space<vmem>>, vector<1x8xf32>
    %111 = vector.shape_cast %110 : vector<1x8xf32> to vector<1x1x8xf32>
    %112 = vector.broadcast %111 : vector<1x1x8xf32> to vector<1x16x8xf32>
    %113 = arith.addf %109, %112 : vector<1x16x8xf32>
    %114 = arith.negf %113 : vector<1x16x8xf32>
    %115 = math.exp %114 : vector<1x16x8xf32>
    %cst_45 = arith.constant 1.000000e+00 : f32
    %116 = vector.broadcast %cst_45 : f32 to vector<1x16x8xf32>
    %117 = arith.addf %116, %115 : vector<1x16x8xf32>
    %118 = arith.divf %116, %117 : vector<1x16x8xf32>
    %119 = arith.mulf %113, %118 : vector<1x16x8xf32>
    %c0_46 = arith.constant 0 : index
    %c0_47 = arith.constant 0 : index
    %c0_48 = arith.constant 0 : index
    %120 = vector.load %arg14[%c0_46, %c0_47, %c0_48] : memref<1x16x8xf32, #tpu.memory_space<vmem>>, vector<1x16x8xf32>
    tpu.vector_store %arg14[%c0_46, %c0_47, %c0_48], %119 {strides = array<i32>} : memref<1x16x8xf32, #tpu.memory_space<vmem>>, vector<1x16x8xf32>,
    return
  }
  func.func @transform_0(%arg0: i32) -> (i32, i32, i32) {
    %c0_i32 = arith.constant 0 : i32
    %c0_i32_0 = arith.constant 0 : i32
    %c0_i32_1 = arith.constant 0 : i32
    return %arg0, %c0_i32, %c0_i32_0 : i32, i32, i32
  }
  func.func @transform_1(%arg0: i32) -> (i32, i32) {
    %c0_i32 = arith.constant 0 : i32
    %c0_i32_0 = arith.constant 0 : i32
    %c0_i32_1 = arith.constant 0 : i32
    return %c0_i32, %c0_i32_0 : i32, i32
  }
  func.func @transform_2(%arg0: i32) -> (i32, i32) {
    %c0_i32 = arith.constant 0 : i32
    %c0_i32_0 = arith.constant 0 : i32
    %c0_i32_1 = arith.constant 0 : i32
    return %c0_i32, %c0_i32_0 : i32, i32
  }
  func.func @transform_3(%arg0: i32) -> (i32, i32) {
    %c0_i32 = arith.constant 0 : i32
    %c0_i32_0 = arith.constant 0 : i32
    %c0_i32_1 = arith.constant 0 : i32
    return %c0_i32, %c0_i32_0 : i32, i32
  }
  func.func @transform_4(%arg0: i32) -> (i32, i32) {
    %c0_i32 = arith.constant 0 : i32
    %c0_i32_0 = arith.constant 0 : i32
    %c0_i32_1 = arith.constant 0 : i32
    return %c0_i32, %c0_i32_0 : i32, i32
  }
  func.func @transform_5(%arg0: i32) -> (i32, i32) {
    %c0_i32 = arith.constant 0 : i32
    %c0_i32_0 = arith.constant 0 : i32
    %c0_i32_1 = arith.constant 0 : i32
    return %c0_i32, %c0_i32_0 : i32, i32
  }
  func.func @transform_6(%arg0: i32) -> (i32, i32) {
    %c0_i32 = arith.constant 0 : i32
    %c0_i32_0 = arith.constant 0 : i32
    %c0_i32_1 = arith.constant 0 : i32
    return %c0_i32, %c0_i32_0 : i32, i32
  }
  func.func @transform_7(%arg0: i32) -> (i32, i32) {
    %c0_i32 = arith.constant 0 : i32
    %c0_i32_0 = arith.constant 0 : i32
    %c0_i32_1 = arith.constant 0 : i32
    return %c0_i32, %c0_i32_0 : i32, i32
  }
  func.func @transform_8(%arg0: i32) -> (i32, i32) {
    %c0_i32 = arith.constant 0 : i32
    %c0_i32_0 = arith.constant 0 : i32
    %c0_i32_1 = arith.constant 0 : i32
    return %c0_i32, %c0_i32_0 : i32, i32
  }
  func.func @transform_9(%arg0: i32) -> (i32, i32) {
    %c0_i32 = arith.constant 0 : i32
    %c0_i32_0 = arith.constant 0 : i32
    %c0_i32_1 = arith.constant 0 : i32
    return %c0_i32, %c0_i32_0 : i32, i32
  }
  func.func @transform_10(%arg0: i32) -> (i32, i32) {
    %c0_i32 = arith.constant 0 : i32
    %c0_i32_0 = arith.constant 0 : i32
    %c0_i32_1 = arith.constant 0 : i32
    return %c0_i32, %c0_i32_0 : i32, i32
  }
  func.func @transform_11(%arg0: i32) -> (i32, i32) {
    %c0_i32 = arith.constant 0 : i32
    %c0_i32_0 = arith.constant 0 : i32
    %c0_i32_1 = arith.constant 0 : i32
    return %c0_i32, %c0_i32_0 : i32, i32
  }
  func.func @transform_12(%arg0: i32) -> (i32, i32) {
    %c0_i32 = arith.constant 0 : i32
    %c0_i32_0 = arith.constant 0 : i32
    %c0_i32_1 = arith.constant 0 : i32
    return %c0_i32, %c0_i32_0 : i32, i32
  }
  func.func @transform_13(%arg0: i32) -> (i32, i32, i32) {
    %c0_i32 = arith.constant 0 : i32
    %c0_i32_0 = arith.constant 0 : i32
    %c0_i32_1 = arith.constant 0 : i32
    return %arg0, %c0_i32, %c0_i32_0 : i32, i32, i32
  }
}

</mosaic_0001>

<bundles_post_ra>
// kernel: tpu_custom_call.1
= control target key start
LH: loop header
LB: loop body
LE: loop exit
PB: predicated region body
PF: predicated region fallthrough
CT: control target
= control target key end

     0   :  { %s1077_s25 = smov 0   ;;  %s1154_s0 = inlined_call_operand.vmem [shape: bf16[2,16,8], index: 0, kind: input, shape index: {}]   ;;  %s1155_s1 = inlined_call_operand.vmem [shape: bf16[8,32], index: 1, kind: input, shape index: {}]   ;;  %s1156_s2 = inlined_call_operand.vmem [shape: f32[1,32], index: 2, kind: input, shape index: {}]   ;;  %s1157_s3 = inlined_call_operand.vmem [shape: f32[1,32], index: 3, kind: input, shape index: {}]   ;;  %s1158_s4 = inlined_call_operand.vmem [shape: f32[1,32], index: 4, kind: input, shape index: {}]   ;;  %s1159_s5 = inlined_call_operand.vmem [shape: bf16[32,16], index: 5, kind: input, shape index: {}]   ;;  %s1160_s6 = inlined_call_operand.vmem [shape: f32[1,16], index: 6, kind: input, shape index: {}]   ;;  %s1161_s7 = inlined_call_operand.vmem [shape: f32[1,16], index: 7, kind: input, shape index: {}]   ;;  %s1162_s8 = inlined_call_operand.vmem [shape: f32[1,16], index: 8, kind: input, shape index: {}]   ;;  %s1163_s9 = inlined_call_operand.vmem [shape: bf16[16,8], index: 9, kind: input, shape index: {}]   ;;  %s1164_s10 = inlined_call_operand.vmem [shape: f32[1,8], index: 10, kind: input, shape index: {}]   ;;  %s1165_s11 = inlined_call_operand.vmem [shape: f32[1,8], index: 11, kind: input, shape index: {}]   ;;  %s1166_s12 = inlined_call_operand.vmem [shape: f32[1,8], index: 12, kind: input, shape index: {}]   ;;  %s1167_s13 = inlined_call_operand.vmem [shape: f32[2,16,8], index: 13, kind: output, shape index: {}]  }
   0x1 LB: > { %s891_s26 = sadd.s32 4294967295, %s1003_s25   ;;  %p895_p0 = scmp.ge.s32.totalorder %s1003_s25, 1  ;;  %s1003_s25 = sphi %s1077_s25, %s23_s25  }
   0x2   : > { %p387_p1 = scmp.lt.s32.totalorder %s1003_s25, 3 }
   0x4   : > { %p388_p2 = pnand %p895_p0, %p387_p1 }
   0x5   : > { %v444_v0 = vld [vmem:[%s1155_s1] sm:$0xf] (!%p388_p2)  ;;  %vm461_vm0 = vcmask (!%p388_p2), 1043456   ;;  %p431_p3 = scmp.lt.s32.totalorder (!%p388_p2), %s891_s26, 1  ;;  %v1005_v1 = vmov (!%p388_p2), 0.0   ;;  %vm1006_vm1 = vmmov (!%p388_p2), 0  }
   0x6   : > { %391 = sbr.rel (%p388_p2) target bundleno = 1307 (0x51b), region = 72  ;;  %933 = vmatprep.subr.bf16.mxu0 (!%p388_p2), %v1005_v1  ;;  %v463_v2 = vsel (!%p388_p2), %vm461_vm0, %v444_v0, 0  ;;  %935 = vmatprep.mubr.msk.bf16.mxu0 (!%p388_p2), %vm1006_vm1, %v1005_v1  ;;  %vm457_vm2 = vcmask (!%p388_p2), 64512   ;;  %v900_v4 = vld [vmem:[%s1156_s2] ss:$0 sm:$0xff] (!%p388_p2)  ;;  %vm506_vm3 = vcmask (!%p388_p2), 261120  }
   0x7   : > { %934 = vmatpush3.bf16.msra.mxu0 (!%p388_p2), %v463_v2  ;;  %939 = vmatprep.subr.bf16.mxu1 (!%p388_p2), %v1005_v1  ;;  %v964_v19 = vld [vmem:[%s1159_s5] sm:$0xff] (!%p388_p2)   ;;  %v965_v20 = vld [vmem:[%s1159_s5 + $0x8] sm:$0xff] (!%p388_p2)   ;;  %vm641_vm4 = vcmask (!%p388_p2), 130048  }
   0x8   : > { %943 = vmatprep.mubr.msk.bf16.mxu1 (!%p388_p2), %vm1006_vm1, %v1005_v1  ;;  %947 = vmatprep.subr.bf16.mxu0 (!%p388_p2), %v1005_v1  ;;  %v903_v43 = vld [vmem:[%s1157_s3] ss:$0 sm:$0xff] (!%p388_p2) }
   0x9   : > { %940 = vmatpush3.bf16.msra.mxu1 (!%p388_p2), %v964_v19  ;;  %v904_v46 = vld [vmem:[%s1158_s4] ss:$0 sm:$0xff] (!%p388_p2) }
   0xa   : > { %941 = vmatprep.subr.bf16.mxu1 (!%p388_p2), %v1005_v1  ;;  %v907_v62 = vld [vmem:[%s1160_s6] ss:$0 sm:$0xff] (!%p388_p2) }
   0xd   : > { %s1169_s26 = smov (!%p431_p3, %s891_s26), 1  ;;  %942 = vmatpush3.bf16.msra.mxu1 %v965_v20 }
   0xe   : > { %s924_s29 = sshll.u32 %s1169_s26, 3  ;;  %s925_s27 = sshll.u32 %s1169_s26, 4 }
   0xf   : > { %s435_s15 = scalar_lea.vmem %s1154_s0, %s924_s29  ;;  %s440_s30 = scalar_lea.vmem %s1167_s13, %s925_s27 }
  0x10   : > { %v963_v3 = vld [vmem:[%s435_s15] sm:$0xff]  }
  0x11   : > { %936 = vmatmul.mubr.msk.bf16.vlgmr.msra.gmra.mrb[0].mxu0 %vm457_vm2, %v963_v3 }
  0x12   : > { %949 = vmatprep.mubr.msk.bf16.mxu0 %vm1006_vm1, %v1005_v1 }
  0xe4   : > { %v499_v5 = vpop.f32.mrb[0].mxu0 }
  0xe5   : > { %v500_v6 = vadd.f32 %v900_v4, %v499_v5  ;;  %v937_v7 = vpop.f32.mrb[1].mxu0 }
  0xe6   : > { %v502_v8 = vpop.f32.mrb[2].mxu0 }
  0xe7   : > { %v503_v9 = vadd.f32 %v900_v4, %v502_v8  ;;  %v938_v10 = vpop.f32.mrb[3].mxu0  ;;  %v507_v11 = vsel %vm506_vm3, %v500_v6, 0.0  ;;  %v518_v13 = vmul.f32 %v500_v6, %v500_v6 }
  0xe9   : > { %v508_v12 = vsel %vm506_vm3, %v503_v9, 0.0  ;;  %v519_v14 = vmul.f32 %v503_v9, %v503_v9  ;;  %v520_v17 = vsel %vm506_vm3, %v518_v13, 0.0  ;;  %v966_v13 = vld [vmem:[%s1163_s9] sm:$0xff]  }
  0xea   : > { %v509_v15 = vadd.f32 %v508_v12, %v507_v11  ;;  %948 = vmatpush3.bf16.msra.mxu0 %v966_v13 }
  0xeb   : > { %v521_v16 = vsel %vm506_vm3, %v519_v14, 0.0 }
  0xec   : > { %510 = vadd.xlane.f32.xlu0 %v509_v15  ;;  %v522_v18 = vadd.f32 %v521_v16, %v520_v17 }
  0xf0   : > { %523 = vadd.xlane.f32.xlu0 %v522_v18 }
 0x179   : > { %v511_v21 = vpop.xlane.xlu0 %510 }
 0x17a   : > { %v512_v22 = vrot.slane %v511_v21, 4 }
 0x17c   : > { %v513_v23 = vadd.f32 %v512_v22, %v511_v21 }
 0x17d   : > { %v524_v24 = vpop.xlane.xlu0 %523 }
 0x17e   : > { %v514_v25 = vrot.slane %v513_v23, 2  ;;  %v525_v26 = vrot.slane %v524_v24, 4 }
 0x180   : > { %v515_v27 = vadd.f32 %v514_v25, %v513_v23  ;;  %v526_v28 = vadd.f32 %v525_v26, %v524_v24 }
 0x182   : > { %v516_v29 = vrot.slane %v515_v27, 1  ;;  %v527_v30 = vrot.slane %v526_v28, 2 }
 0x184   : > { %v517_v31 = vadd.f32 %v516_v29, %v515_v27  ;;  %v528_v32 = vadd.f32 %v527_v30, %v526_v28 }
 0x186   : > { %v531_v33 = vmul.f32 0.001953125, %v517_v31  ;;  %v529_v34 = vrot.slane %v528_v32, 1 }
 0x188   : > { %v530_v35 = vadd.f32 %v529_v34, %v528_v32  ;;  %v533_v36 = vmul.f32 %v531_v33, %v531_v33  ;;  %v535_v40 = vsub.f32 %v500_v6, %v531_v33  ;;  %v536_v41 = vsub.f32 %v503_v9, %v531_v33 }
 0x18a   : > { %v532_v37 = vmul.f32 0.001953125, %v530_v35 }
 0x18c   : > { %v534_v38 = vsub.f32 %v532_v37, %v533_v36  ;;  %v911_v36 = vld [vmem:[%s1161_s7] ss:$0 sm:$0xff] }
 0x18e   : > { %v537_v39 = vadd.f32 1e-05, %v534_v38 }
 0x190   : > { %967 = vrsqrt.f32 %v537_v39  ;;  %v912_v39 = vld [vmem:[%s1162_s8] ss:$0 sm:$0xff] }
 0x19a   : > { %v968_v42 = vpop.eup %967 }
 0x19b   : > { %v539_v44 = vmul.f32 %v968_v42, %v535_v40  ;;  %v540_v45 = vmul.f32 %v968_v42, %v536_v41 }
 0x19d   : > { %v548_v47 = vmul.f32 %v903_v43, %v539_v44  ;;  %v549_v48 = vmul.f32 %v903_v43, %v540_v45 }
 0x19f   : > { %v557_v49 = vadd.f32 %v904_v46, %v548_v47  ;;  %v558_v50 = vadd.f32 %v904_v46, %v549_v48 }
 0x1a1   : > { %v905_v51 = vmul.f32 -1.442695, %v557_v49  ;;  %v906_v52 = vmul.f32 -1.442695, %v558_v50 }
 0x1a3   : > { %969 = vpow2.f32 %v905_v51 }
 0x1a4   : > { %971 = vpow2.f32 %v906_v52 }
 0x1ad   : > { %v970_v53 = vpop.eup %969 }
 0x1ae   : > { %v972_v54 = vpop.eup %971  ;;  %v565_v55 = vadd.f32 1.0, %v970_v53 }
 0x1af   : > { %v566_v56 = vadd.f32 1.0, %v972_v54 }
 0x1b0   : > { %973 = vrcp.f32 %v565_v55  ;;  %v915_v55 = vld [vmem:[%s1164_s10] ss:$0 sm:$0xff] }
 0x1b1   : > { %975 = vrcp.f32 %v566_v56 }
 0x1ba   : > { %v974_v57 = vpop.eup %973 }
 0x1bb   : > { %v976_v58 = vpop.eup %975  ;;  %v571_v59 = vmul.f32 %v974_v57, %v557_v49 }
 0x1bc   : > { %v572_v60 = vmul.f32 %v976_v58, %v558_v50 }
 0x1be   : > { %v573_v61 = vpack.c.bf16 %v572_v60, %v571_v59 }
 0x1c0   : > { %944 = vmatmul.mubr.msk.bf16.vlgmr.msra.gmra.mrb[0].mxu1 %vm506_vm3, %v573_v61 }
 0x293   : > { %v634_v63 = vpop.f32.mrb[0].mxu1 }
 0x294   : > { %v635_v0 = vadd.f32 %v907_v62, %v634_v63  ;;  %v945_v1 = vpop.f32.mrb[1].mxu1 }
 0x295   : > { %v637_v2 = vpop.f32.mrb[2].mxu1 }
 0x296   : > { %v638_v3 = vadd.f32 %v907_v62, %v637_v2  ;;  %v946_v4 = vpop.f32.mrb[3].mxu1  ;;  %v642_v5 = vsel %vm641_vm4, %v635_v0, 0.0  ;;  %v653_v7 = vmul.f32 %v635_v0, %v635_v0 }
 0x298   : > { %v643_v6 = vsel %vm641_vm4, %v638_v3, 0.0  ;;  %v654_v8 = vmul.f32 %v638_v3, %v638_v3  ;;  %v655_v11 = vsel %vm641_vm4, %v653_v7, 0.0 }
 0x299   : > { %v644_v9 = vadd.f32 %v643_v6, %v642_v5 }
 0x29a   : > { %v656_v10 = vsel %vm641_vm4, %v654_v8, 0.0 }
 0x29b   : > { %645 = vadd.xlane.f32.xlu1 %v644_v9  ;;  %v657_v12 = vadd.f32 %v656_v10, %v655_v11 }
 0x29f   : > { %658 = vadd.xlane.f32.xlu1 %v657_v12 }
 0x328   : > { %v646_v14 = vpop.xlane.xlu1 %645 }
 0x329   : > { %v647_v15 = vrot.slane %v646_v14, 4 }
 0x32b   : > { %v648_v16 = vadd.f32 %v647_v15, %v646_v14 }
 0x32c   : > { %v659_v17 = vpop.xlane.xlu1 %658 }
 0x32d   : > { %v649_v18 = vrot.slane %v648_v16, 2  ;;  %v660_v19 = vrot.slane %v659_v17, 4 }
 0x32f   : > { %v650_v20 = vadd.f32 %v649_v18, %v648_v16  ;;  %v661_v21 = vadd.f32 %v660_v19, %v659_v17 }
 0x331   : > { %v651_v22 = vrot.slane %v650_v20, 1  ;;  %v662_v23 = vrot.slane %v661_v21, 2 }
 0x333   : > { %v652_v24 = vadd.f32 %v651_v22, %v650_v20  ;;  %v663_v25 = vadd.f32 %v662_v23, %v661_v21 }
 0x335   : > { %v666_v26 = vmul.f32 0.00390625, %v652_v24  ;;  %v664_v27 = vrot.slane %v663_v25, 1 }
 0x337   : > { %v665_v28 = vadd.f32 %v664_v27, %v663_v25  ;;  %v668_v29 = vmul.f32 %v666_v26, %v666_v26  ;;  %v670_v33 = vsub.f32 %v635_v0, %v666_v26  ;;  %v671_v34 = vsub.f32 %v638_v3, %v666_v26 }
 0x339   : > { %v667_v30 = vmul.f32 0.00390625, %v665_v28  ;;  %v918_v28 = vld [vmem:[%s1165_s11] ss:$0 sm:$0xff] }
 0x33b   : > { %v669_v31 = vsub.f32 %v667_v30, %v668_v29 }
 0x33d   : > { %v672_v32 = vadd.f32 1e-05, %v669_v31  ;;  %v919_v31 = vld [vmem:[%s1166_s12] ss:$0 sm:$0xff] }
 0x33f   : > { %977 = vrsqrt.f32 %v672_v32 }
 0x349   : > { %v978_v35 = vpop.eup %977 }
 0x34a   : > { %v674_v37 = vmul.f32 %v978_v35, %v670_v33  ;;  %v675_v38 = vmul.f32 %v978_v35, %v671_v34 }
 0x34c   : > { %v683_v40 = vmul.f32 %v911_v36, %v674_v37  ;;  %v684_v41 = vmul.f32 %v911_v36, %v675_v38 }
 0x34e   : > { %v692_v42 = vadd.f32 %v912_v39, %v683_v40  ;;  %v693_v43 = vadd.f32 %v912_v39, %v684_v41 }
 0x350   : > { %v913_v44 = vmul.f32 -1.442695, %v692_v42  ;;  %v914_v45 = vmul.f32 -1.442695, %v693_v43 }
 0x352   : > { %979 = vpow2.f32 %v913_v44 }
 0x353   : > { %981 = vpow2.f32 %v914_v45 }
 0x35c   : > { %v980_v46 = vpop.eup %979 }
 0x35d   : > { %v982_v47 = vpop.eup %981  ;;  %v700_v48 = vadd.f32 1.0, %v980_v46 }
 0x35e   : > { %v701_v49 = vadd.f32 1.0, %v982_v47 }
 0x35f   : > { %983 = vrcp.f32 %v700_v48 }
 0x360   : > { %985 = vrcp.f32 %v701_v49 }
 0x369   : > { %v984_v50 = vpop.eup %983 }
 0x36a   : > { %v986_v51 = vpop.eup %985  ;;  %v706_v52 = vmul.f32 %v984_v50, %v692_v42 }
 0x36b   : > { %v707_v53 = vmul.f32 %v986_v51, %v693_v43 }
 0x36d   : > { %v708_v54 = vpack.c.bf16 %v707_v53, %v706_v52 }
 0x36f   : > { %950 = vmatmul.mubr.msk.bf16.vlgmr.msra.gmra.mrb[4].mxu0 %vm641_vm4, %v708_v54 }
 0x442   : > { %v761_v56 = vpop.f32.mrb[4].mxu0 }
 0x443   : > { %v762_v57 = vadd.f32 %v915_v55, %v761_v56  ;;  %v951_v58 = vpop.f32.mrb[5].mxu0 }
 0x444   : > { %v764_v59 = vpop.f32.mrb[6].mxu0 }
 0x445   : > { %v765_v60 = vadd.f32 %v915_v55, %v764_v59  ;;  %v952_v61 = vpop.f32.mrb[7].mxu0  ;;  %v779_v62 = vmul.f32 %v762_v57, %v762_v57  ;;  %v768_v63 = vsel %vm457_vm2, %v762_v57, 0.0 }
 0x447   : > { %v769_v0 = vsel %vm457_vm2, %v765_v60, 0.0  ;;  %v780_v1 = vmul.f32 %v765_v60, %v765_v60  ;;  %v781_v3 = vsel %vm457_vm2, %v779_v62, 0.0 }
 0x448   : > { %v770_v2 = vadd.f32 %v769_v0, %v768_v63 }
 0x449   : > { %v782_v4 = vsel %vm457_vm2, %v780_v1, 0.0 }
 0x44a   : > { %771 = vadd.xlane.f32.xlu0 %v770_v2  ;;  %v783_v5 = vadd.f32 %v782_v4, %v781_v3 }
 0x44c   : > { %784 = vadd.xlane.f32.xlu1 %v783_v5 }
 0x4d7   : > { %v772_v6 = vpop.xlane.xlu0 %771 }
 0x4d8   : > { %v773_v7 = vrot.slane %v772_v6, 4 }
 0x4d9   : > { %v785_v8 = vpop.xlane.xlu1 %784 }
 0x4da   : > { %v774_v9 = vadd.f32 %v773_v7, %v772_v6  ;;  %v786_v10 = vrot.slane %v785_v8, 4 }
 0x4dc   : > { %v775_v11 = vrot.slane %v774_v9, 2  ;;  %v787_v12 = vadd.f32 %v786_v10, %v785_v8 }
 0x4de   : > { %v776_v13 = vadd.f32 %v775_v11, %v774_v9  ;;  %v788_v14 = vrot.slane %v787_v12, 2 }
 0x4e0   : > { %v777_v15 = vrot.slane %v776_v13, 1  ;;  %v789_v16 = vadd.f32 %v788_v14, %v787_v12 }
 0x4e2   : > { %v778_v17 = vadd.f32 %v777_v15, %v776_v13  ;;  %v790_v18 = vrot.slane %v789_v16, 1 }
 0x4e4   : > { %v792_v19 = vmul.f32 0.0078125, %v778_v17  ;;  %v791_v20 = vadd.f32 %v790_v18, %v789_v16 }
 0x4e6   : > { %v793_v21 = vmul.f32 0.0078125, %v791_v20  ;;  %v794_v22 = vmul.f32 %v792_v19, %v792_v19  ;;  %v796_v25 = vsub.f32 %v762_v57, %v792_v19  ;;  %v797_v26 = vsub.f32 %v765_v60, %v792_v19 }
 0x4e8   : > { %v795_v23 = vsub.f32 %v793_v21, %v794_v22 }
 0x4ea   : > { %v798_v24 = vadd.f32 1e-05, %v795_v23 }
 0x4ec   : > { %987 = vrsqrt.f32 %v798_v24 }
 0x4f6   : > { %v988_v27 = vpop.eup %987 }
 0x4f7   : > { %v800_v29 = vmul.f32 %v988_v27, %v796_v25  ;;  %v801_v30 = vmul.f32 %v988_v27, %v797_v26 }
 0x4f9   : > { %v809_v32 = vmul.f32 %v918_v28, %v800_v29  ;;  %v810_v33 = vmul.f32 %v918_v28, %v801_v30 }
 0x4fb   : > { %v818_v34 = vadd.f32 %v919_v31, %v809_v32  ;;  %v819_v35 = vadd.f32 %v919_v31, %v810_v33 }
 0x4fd   : > { %v920_v36 = vmul.f32 -1.442695, %v818_v34  ;;  %v921_v37 = vmul.f32 -1.442695, %v819_v35 }
 0x4ff   : > { %989 = vpow2.f32 %v920_v36 }
 0x500   : > { %991 = vpow2.f32 %v921_v37 }
 0x509   : > { %v990_v38 = vpop.eup %989 }
 0x50a   : > { %v992_v39 = vpop.eup %991  ;;  %v826_v40 = vadd.f32 1.0, %v990_v38 }
 0x50b   : > { %v827_v41 = vadd.f32 1.0, %v992_v39 }
 0x50c   : > { %993 = vrcp.f32 %v826_v40 }
 0x50d   : > { %995 = vrcp.f32 %v827_v41 }
 0x516   : > { %v994_v42 = vpop.eup %993 }
 0x517   : > { %v996_v43 = vpop.eup %995  ;;  %v832_v44 = vmul.f32 %v994_v42, %v818_v34 }
 0x518   : > { %v833_v45 = vmul.f32 %v996_v43, %v819_v35 }
 0x519   : > { %834 = vst.msk [vmem:[%s440_s30] sm:$0xff] %vm457_vm2, %v832_v44 }
 0x51a   : > { %835 = vst.msk [vmem:[%s440_s30 + $0x8] sm:$0xff] %vm457_vm2, %v833_v45 }
 0x51b PF: > { %s23_s25 = sadd.s32 1, %s1003_s25  }
 0x51c   : > { %p20_p4 = scmp.ge.s32.totalorder %s23_s25, 4  }
 0x51e   :  { %22 = sbr.rel (!%p20_p4) target bundleno = 1 (0x1), region = 102 }

</bundles_post_ra>
